<compile_context>
chip_gen: v7x
topology: tpu7x:2x2x1
jax: 0.10.0
libtpu: 0.0.40
codegen_flags: <defaults>
</compile_context>

<pallas_src>
import functools

import jax
import jax.numpy as jnp
from jax.experimental import pallas as pl
from jax.experimental.pallas import tpu as pltpu


def _locked_dropout_kernel(bits_ref, x_ref, o_ref, *, threshold, inv_keep):
    # bits_ref: (tT, H) uint32, x_ref/o_ref: (tT, B, H)
    keep = bits_ref[...] < jnp.uint32(threshold)          # Bernoulli(keep_prob)
    mask = (keep.astype(jnp.float32) * inv_keep).astype(o_ref.dtype)  # (tT, H)
    # Broadcast the mask over the batch axis (the "locked" part).
    o_ref[...] = x_ref[...] * mask[:, None, :]


def locked_dropout(x, dropout, seed, training=True, block_bytes=2 * 1024 * 1024):
    """JAX/Pallas equivalent of LockedDropout.forward.

    x: (T, B, H) array.  dropout: python float.  seed: python int.
    `training` / `dropout` must be static Python values (matches nn.Module).
    """
    if not training or dropout == 0.0:
        return x

    keep_prob = 1.0 - float(dropout)
    inv_keep = 1.0 / keep_prob
    # Integer Bernoulli threshold: P(bits < threshold) == keep_prob.
    threshold = min(int(keep_prob * 4294967296.0), 4294967295)

    T, B, H = x.shape

    # One uint32 per (t, h) position; identical across B by construction.
    bits = jax.random.bits(jax.random.PRNGKey(seed), (T, H), dtype=jnp.uint32)

    # Choose a T tile targeting ~block_bytes per x block (double-buffered in +
    # out stays well under the scoped-VMEM defaults on all generations).
    bytes_per_row = B * H * x.dtype.itemsize + H * 4
    tT = max(8, (block_bytes // max(bytes_per_row, 1)) // 8 * 8)
    if tT >= T:
        tT = T  # full-dim block; no (8,128) divisibility requirement.

    kernel = functools.partial(
        _locked_dropout_kernel, threshold=threshold, inv_keep=inv_keep
    )

    grid = (pl.cdiv(T, tT),)
    # TODO(synk): for tiny B (< 8 sublanes) a wrapper-side repack to a
    # (rows>=8, lanes=128k) layout would improve vreg utilization; production
    # shapes (H % 128 == 0, large B*T) don't need it.
    return pl.pallas_call(
        kernel,
        out_shape=jax.ShapeDtypeStruct(x.shape, x.dtype),
        grid=grid,
        in_specs=[
            pl.BlockSpec((tT, H), lambda i: (i, 0)),        # mask bits
            pl.BlockSpec((tT, B, H), lambda i: (i, 0, 0)),  # x
        ],
        out_specs=pl.BlockSpec((tT, B, H), lambda i: (i, 0, 0)),
        compiler_params=pltpu.CompilerParams(
            dimension_semantics=("parallel",)
        ),
    )(bits, x)


if __name__ == "__main__":
    key = jax.random.PRNGKey(0)
    T, B, H = 8, 2, 32
    dropout_p = 0.5

    x = jax.random.normal(key, (T, B, H), dtype=jnp.float32)

    out = locked_dropout(x, dropout_p, seed=1234, training=True)
    out = jax.block_until_ready(out)

    assert out.shape == x.shape and out.dtype == x.dtype

    # Verify the "locked" property: the implied mask is identical across batch.
    ratio0 = out[:, 0, :] / x[:, 0, :]
    ratio1 = out[:, 1, :] / x[:, 1, :]
    assert jnp.allclose(ratio0, ratio1, atol=1e-5)

    # Mask values are either 0 or 1/(1-p).
    scale = 1.0 / (1.0 - dropout_p)
    is_zero = jnp.isclose(ratio0, 0.0, atol=1e-5)
    is_scale = jnp.isclose(ratio0, scale, atol=1e-4)
    assert bool(jnp.all(is_zero | is_scale))

    # Eval mode is identity.
    out_eval = locked_dropout(x, dropout_p, seed=1234, training=False)
    assert bool(jnp.all(out_eval == x))

    print("KERNEL_OK")
</pallas_src>

<mosaic_0001>
module attributes {stable_mosaic.version = 11 : i64} {
  func.func @_locked_dropout_kernel(%arg0: i32, %arg1: memref<8x32xi32, #tpu.memory_space<vmem>>, %arg2: memref<8x2x32xf32, #tpu.memory_space<vmem>>, %arg3: memref<8x2x32xf32, #tpu.memory_space<vmem>>) attributes {dimension_semantics = [#tpu.dimension_semantics<parallel>], iteration_bounds = array<i64: 1>, scalar_prefetch = 0 : i64, scratch_operands = 0 : i64, tpu.core_type = #tpu.core_type<tc>, window_params = [{transform_indices = @transform_0, window_bounds = array<i64: 8, 32>}, {transform_indices = @transform_1, window_bounds = array<i64: 8, 2, 32>}, {transform_indices = @transform_2, window_bounds = array<i64: 8, 2, 32>}]} {
    %c0 = arith.constant 0 : index
    %c0_0 = arith.constant 0 : index
    %0 = vector.load %arg1[%c0, %c0_0] : memref<8x32xi32, #tpu.memory_space<vmem>>, vector<8x32xi32>
    %c-2147483648_i32 = arith.constant -2147483648 : i32
    %1 = vector.broadcast %c-2147483648_i32 : i32 to vector<8x32xi32>
    %2 = arith.cmpi ult, %0, %1 : vector<8x32xi32>
    %3 = arith.extui %2 : vector<8x32xi1> to vector<8x32xi32>
    %4 = arith.sitofp %3 : vector<8x32xi32> to vector<8x32xf32>
    %cst = arith.constant 2.000000e+00 : f32
    %5 = vector.broadcast %cst : f32 to vector<8x32xf32>
    %6 = arith.mulf %4, %5 : vector<8x32xf32>
    %c0_1 = arith.constant 0 : index
    %c0_2 = arith.constant 0 : index
    %c0_3 = arith.constant 0 : index
    %7 = vector.load %arg2[%c0_1, %c0_2, %c0_3] : memref<8x2x32xf32, #tpu.memory_space<vmem>>, vector<8x2x32xf32>
    %8 = vector.shape_cast %6 : vector<8x32xf32> to vector<8x1x32xf32>
    %9 = vector.broadcast %8 : vector<8x1x32xf32> to vector<8x2x32xf32>
    %10 = arith.mulf %7, %9 : vector<8x2x32xf32>
    %c0_4 = arith.constant 0 : index
    %c0_5 = arith.constant 0 : index
    %c0_6 = arith.constant 0 : index
    %11 = vector.load %arg3[%c0_4, %c0_5, %c0_6] : memref<8x2x32xf32, #tpu.memory_space<vmem>>, vector<8x2x32xf32>
    tpu.vector_store %arg3[%c0_4, %c0_5, %c0_6], %10 {strides = array<i32>} : memref<8x2x32xf32, #tpu.memory_space<vmem>>, vector<8x2x32xf32>,
    return
  }
  func.func @transform_0(%arg0: i32) -> (i32, i32) {
    %c0_i32 = arith.constant 0 : i32
    %c0_i32_0 = arith.constant 0 : i32
    return %arg0, %c0_i32 : i32, i32
  }
  func.func @transform_1(%arg0: i32) -> (i32, i32, i32) {
    %c0_i32 = arith.constant 0 : i32
    %c0_i32_0 = arith.constant 0 : i32
    %c0_i32_1 = arith.constant 0 : i32
    return %arg0, %c0_i32, %c0_i32_0 : i32, i32, i32
  }
  func.func @transform_2(%arg0: i32) -> (i32, i32, i32) {
    %c0_i32 = arith.constant 0 : i32
    %c0_i32_0 = arith.constant 0 : i32
    %c0_i32_1 = arith.constant 0 : i32
    return %arg0, %c0_i32, %c0_i32_0 : i32, i32, i32
  }
}

</mosaic_0001>

<bundles_post_ra>
// kernel: tpu_custom_call.1
= control target key start
LH: loop header
LB: loop body
LE: loop exit
PB: predicated region body
PF: predicated region fallthrough
CT: control target
= control target key end

     0   :  { %7 = vsyncpa [#allocation3], 0  ;;  %s335_s0 = inlined_call_operand.hbm [shape: u32[8,32], index: 0, kind: input, shape index: {}]   ;;  %s336_s1 = inlined_call_operand.hbm [shape: f32[8,2,32], index: 1, kind: input, shape index: {}]   ;;  %s337_s2 = inlined_call_operand.hbm [shape: f32[8,2,32], index: 2, kind: output, shape index: {}]  }
   0x1   :  { %8 = vsyncpa [#allocation6], 0 }
   0x2   :  { %9 = vsyncpa [#allocation4], 0  ;;  %s256_s9 = smov [#allocation2]   ;;  %s257_s11 = smov [#allocation5]  }
   0x3   :  { %s16_s10 = sshll.u32 %s256_s9, 4  ;;  %s25_s12 = sshll.u32 %s257_s11, 4  ;;  %s17_s10 = int_to_ptr.vmem [resolvable:$true] %s16_s10  ;;  %s278_s12 = int_to_ptr.vmem [resolvable:$true] %s25_s12 }
   0x4   :  { %s184_s15 = scalar_lea.hbm %s335_s0, 128 }
   0x5   :  { %p185_p0 = scmp.ne.s32.totalorder %s335_s0, %s184_s15  ;;  %p188_p1 = scmp.lt.u32.totalorder %s184_s15, %s335_s0 }
   0x7   :  { %p190_p2 = pnand %p188_p1, %p185_p0 }
   0x9   :  { %193 = shalt.err (!%p190_p2)
}
   0xa   :  { %s194_s20 = scalar_lea.vmem %s17_s10, 128  ;;  %p199_p4 = scmp.lt.s32.totalorder %s17_s10, %s17_s10 }
   0xb   :  { %p195_p3 = scmp.ne.s32.totalorder %s17_s10, %s194_s20  ;;  %p200_p5 = scmp.lt.s32.totalorder %s194_s20, %s194_s20 }
   0xd   :  { %p201_p6 = por %p200_p5, %p199_p4 }
   0xf   :  { %p202_p7 = pnand %p201_p6, %p195_p3 }
  0x11   :  { %205 = shalt.err (!%p202_p7)
}
  0x12   :  { %19 = dma.hbm_to_vmem [thread:$0]  %s335_s0, 128, %s17_s10, [#allocation3]  }
  0x13   :  { %s206_s25 = scalar_lea.hbm %s336_s1, 256 }
  0x14   :  { %p207_p8 = scmp.ne.s32.totalorder %s336_s1, %s206_s25  ;;  %p210_p9 = scmp.lt.u32.totalorder %s206_s25, %s336_s1 }
  0x16   :  { %p212_p10 = pnand %p210_p9, %p207_p8 }
  0x18   :  { %215 = shalt.err (!%p212_p10)
}
  0x19   :  { %s216_s30 = scalar_lea.vmem %s278_s12, 256  ;;  %p221_p12 = scmp.lt.s32.totalorder %s278_s12, %s278_s12 }
  0x1a   :  { %p217_p11 = scmp.ne.s32.totalorder %s278_s12, %s216_s30  ;;  %p222_p13 = scmp.lt.s32.totalorder %s216_s30, %s216_s30 }
  0x1c   :  { %p223_p0 = por %p222_p13, %p221_p12 }
  0x1e   :  { %p224_p1 = pnand %p223_p0, %p217_p11 }
  0x20   :  { %227 = shalt.err (!%p224_p1)
}
  0x21   :  { %s258_s0 = smov 32   ;;  %s259_s3 = smov 2  }
  0x22   :  { %31 = dma.hbm_to_vmem [thread:$0]  %s336_s1, 256, %s278_s12, [#allocation6], %s258_s0, %s258_s0, %s259_s3  }
  0x23   :  { %250 = dma.done.wait [#allocation3], 128  }
  0x24   :  { %251 = vsyncadd [#allocation3], 4294967168 }
  0x25   :  { %252 = dma.done.wait [#allocation6], 256  }
  0x26   :  { %253 = vsyncadd [#allocation6], 4294967040  ;;  %v56_v0 = vlaneseq  ;;  %v260_v1 = vmov 1966171168   ;;  %v38_v5 = vld [vmem:[#allocation2] sm:$0xff]  ;;  %v261_v7 = vmov 0.0  }
  0x27   :  { %v54_v2 = vunpack.c.l.s4 %v260_v1  ;;  %vm39_vm0 = vcmp.lt.u32.totalorder %v38_v5, 2147483648  ;;  %v43_v16 = vld [vmem:[#allocation5] sm:$0x3]  ;;  %vm149_vm1 = vcmask 254976   ;;  %v44_v21 = vld [vmem:[#allocation5 + $0x2] sm:$0x3] }
  0x28   :  { %v57_v4 = vshrl.u32 %v56_v0, 7  ;;  %v176_v8 = vsel %vm39_vm0, 1.0, %v261_v7  ;;  %v45_v22 = vld [vmem:[#allocation5 + $0x4] sm:$0x3]  ;;  %v47_v28 = vld [vmem:[#allocation5 + $0x8] sm:$0x3] }
  0x29   :  { %v55_v3 = vunpack.c.0.s8 %v54_v2  ;;  %v42_v9 = vmul.f32 2.0, %v176_v8  ;;  %v46_v29 = vld [vmem:[#allocation5 + $0x6] sm:$0x3]  ;;  %v48_v36 = vld [vmem:[#allocation5 + $0xa] sm:$0x3]  ;;  %s262_s1 = smov [#allocation7]  }
  0x2a   :  { %v103_v11 = vsub.s32 0, %v57_v4  ;;  %v49_v37 = vld [vmem:[#allocation5 + $0xc] sm:$0x3]  ;;  %v50_v43 = vld [vmem:[#allocation5 + $0xe] sm:$0x3]  ;;  %s163_s6 = sshll.u32 %s262_s1, 4  ;;  %s164_s6 = int_to_ptr.vmem [resolvable:$true] %s163_s6 }
  0x2b   :  { %v58_v6 = vsub.s32 %v55_v3, %v57_v4  ;;  %v52_v12 = vcombine.high %v42_v9, %v42_v9  ;;  %s228_s7 = scalar_lea.vmem %s164_s6, 256  ;;  %p233_p3 = scmp.lt.s32.totalorder %s164_s6, %s164_s6 }
  0x2c   :  { %p229_p2 = scmp.ne.s32.totalorder %s164_s6, %s228_s7  ;;  %p234_p4 = scmp.lt.s32.totalorder %s228_s7, %s228_s7 }
  0x2d   :  { %v59_v10 = vrot.slane %v42_v9, %v58_v6  ;;  %v66_v15 = vrot.slane %v52_v12, %v58_v6 }
  0x2e   :  { %p235_p5 = por %p234_p4, %p233_p3 }
  0x2f   :  { %v75_v13 = vrot.slane %v59_v10, %v58_v6  ;;  %v67_v14 = vcombine.high %v59_v10, %v59_v10  ;;  %v82_v20 = vrot.slane %v66_v15, %v58_v6  ;;  %v68_v23 = vcombine.high %v66_v15, %v66_v15 }
  0x30   :  { %p236_p6 = pnand %p235_p5, %p229_p2 }
  0x31   :  { %v104_v17 = vrot.slane %v75_v13, %v103_v11  ;;  %v89_v18 = vrot.slane %v67_v14, %v58_v6  ;;  %v97_v19 = vcombine.high %v75_v13, %v75_v13  ;;  %v120_v30 = vrot.slane %v82_v20, %v103_v11 }
  0x32   :  { %v96_v31 = vrot.slane %v68_v23, %v58_v6  ;;  %v98_v32 = vcombine.high %v82_v20, %v82_v20 }
  0x33   :  { %v141_v24 = vmul.f32 %v104_v17, %v43_v16  ;;  %v108_v25 = vrot.slane %v89_v18, %v103_v11  ;;  %v112_v26 = vrot.slane %v97_v19, %v103_v11  ;;  %v99_v27 = vcombine.high %v89_v18, %v89_v18 }
  0x34   :  { %v145_v38 = vmul.f32 %v120_v30, %v47_v28  ;;  %v124_v39 = vrot.slane %v96_v31, %v103_v11  ;;  %v128_v40 = vrot.slane %v98_v32, %v103_v11  ;;  %v100_v41 = vcombine.high %v96_v31, %v96_v31 }
  0x35   :  { %150 = vst.msk [vmem:[#allocation7] sm:$0x3] %vm149_vm1, %v141_v24  ;;  %v142_v33 = vmul.f32 %v108_v25, %v44_v21  ;;  %v143_v34 = vmul.f32 %v112_v26, %v45_v22  ;;  %v116_v35 = vrot.slane %v99_v27, %v103_v11 }
  0x36   :  { %154 = vst.msk [vmem:[#allocation7 + $0x8] sm:$0x3] %vm149_vm1, %v145_v38  ;;  %v146_v44 = vmul.f32 %v124_v39, %v48_v36  ;;  %v147_v45 = vmul.f32 %v128_v40, %v49_v37  ;;  %v132_v46 = vrot.slane %v100_v41, %v103_v11 }
  0x37   :  { %151 = vst.msk [vmem:[#allocation7 + $0x2] sm:$0x3] %vm149_vm1, %v142_v33  ;;  %152 = vst.msk [vmem:[#allocation7 + $0x4] sm:$0x3] %vm149_vm1, %v143_v34  ;;  %v144_v42 = vmul.f32 %v116_v35, %v46_v29 }
  0x38   :  { %155 = vst.msk [vmem:[#allocation7 + $0xa] sm:$0x3] %vm149_vm1, %v146_v44  ;;  %156 = vst.msk [vmem:[#allocation7 + $0xc] sm:$0x3] %vm149_vm1, %v147_v45  ;;  %v148_v47 = vmul.f32 %v132_v46, %v50_v43 }
  0x39   :  { %153 = vst.msk [vmem:[#allocation7 + $0x6] sm:$0x3] %vm149_vm1, %v144_v42 }
  0x3a   :  { %157 = vst.msk [vmem:[#allocation7 + $0xe] sm:$0x3] %vm149_vm1, %v148_v47 }
  0x3b   :  { %239 = shalt.err (!%p236_p6)
}
  0x3c   :  { %s240_s10 = scalar_lea.hbm %s337_s2, 256 }
  0x3d   :  { %p241_p7 = scmp.ne.s32.totalorder %s337_s2, %s240_s10  ;;  %p244_p8 = scmp.lt.u32.totalorder %s240_s10, %s337_s2 }
  0x3f   :  { %p246_p9 = pnand %p244_p8, %p241_p7 }
  0x41   :  { %249 = shalt.err (!%p246_p9)
}
  0x42   :  { %169 = dma.vmem_to_hbm [thread:$0]  %s164_s6, 256, %s337_s2, [#allocation4], %s258_s0, %s258_s0, %s259_s3  }
  0x43   :  { %254 = dma.done.wait [#allocation4], 256  }
  0x44   :  { %255 = vsyncadd [#allocation4], 4294967040 }
  0x45   :  { %173 = vsyncpa [#allocation3], 1 }
  0x46   :  { %174 = vsyncpa [#allocation6], 1 }
  0x47   :  { %175 = vsyncpa [#allocation4], 1 }

</bundles_post_ra>
